<compile_context>
chip_gen: v5e
topology: v5e:2x2
jax: 0.10.0
libtpu: 0.0.40
codegen_flags: <defaults>
</compile_context>

<pallas_src>
import numpy as np
import jax
import jax.numpy as jnp
from jax.experimental import pallas as pl
from jax.experimental.pallas import tpu as pltpu

NOUT = 8                       # max head width: len(operations) = 8
NOUTS = [2, 3, 8]              # per-decision head widths: on/off, rotations, operations
H1, H2 = 48, 12                # trunk hidden sizes
BN_EPS = 1e-5
LEAKY_SLOPE = 0.01
LANE = 128


def _leaky_relu(x):
    return jnp.where(x > 0, x, LEAKY_SLOPE * x)


# ----------------------------------------------------------------------------- kernel

def make_controller_kernel(B, W):
    """B = n_qubits*3 decision heads, W = lane width (>= B*NOUT, multiple of 128)."""

    def kernel(slab_ref, u_ref, out_ref):
        # ---- unpack the single parameter slab (one DMA, lane-dense f32) ----
        x12 = slab_ref[0:1, :]                       # (1, W)  precomputed trunk output (lanes >= 12 are 0)
        hb = slab_ref[1:2, :]                        # (1, W)  head biases, lane 8*b+o
        msk = slab_ref[2:3, :]                       # (1, W)  1.0 on valid head outputs
        hwT = slab_ref[8:8 + W, :]                   # (W, W)  head weights: hwT[d, 8*b+o] = W_b[o, d]
        Rm = slab_ref[8 + W:8 + 2 * W, :]            # (W, W)  group reduce:   lane i -> column i//8
        Bc = slab_ref[8 + 2 * W:8 + 3 * W, :]        # (W, W)  group broadcast: column b -> lanes 8b..8b+7
        LT = slab_ref[8 + 3 * W:8 + 4 * W, :]        # (W, W)  segmented (per-head) inclusive prefix-sum

        valid = msk > 0.0                            # (1, W)

        # ---- all B decision heads in one lane-dense MXU matmul ----
        logits = jnp.dot(x12, hwT, preferred_element_type=jnp.float32) + hb      # (1, W)

        # ---- masked softmax over each head's valid lanes ----
        # One shared shift constant (row max): softmax / log-softmax are shift-invariant per head,
        # and the logits here are O(1), so this is numerically safe and avoids per-head XLU maxes.
        neg = jnp.float32(-1e30)
        zm = jnp.where(valid, logits, neg)
        gmax = jnp.max(zm, axis=1, keepdims=True)                                 # (1, 1)
        ez = jnp.exp(zm - gmax)                                                   # invalid lanes -> 0
        sez_h = jnp.dot(ez, Rm, preferred_element_type=jnp.float32)               # per-head sums
        sez = jnp.dot(sez_h, Bc, preferred_element_type=jnp.float32)              # broadcast to lanes
        sez = jnp.maximum(sez, jnp.float32(1e-30))                                # padded groups -> safe
        p = ez / sez                                                              # (1, W), rows of each head sum to 1
        logsm = zm - gmax - jnp.log(sez)                                          # log-softmax on valid lanes

        # Categorical entropy summed over all heads: -sum p*log p (padded lanes excluded)
        ent_sum = -jnp.sum(jnp.where(valid, p * logsm, 0.0), axis=1, keepdims=True)   # (1, 1)

        # ---- inverse-CDF sampling for T independent samples (rows of u_ref) ----
        cum = jnp.dot(p, LT, preferred_element_type=jnp.float32)                  # per-head inclusive CDF
        u = u_ref[...]                                                            # (T, W): head uniform repeated x8
        ind = jnp.where(jnp.logical_and(cum < u, valid), 1.0, 0.0)                # (T, W)
        cnt_h = jnp.dot(ind, Rm, preferred_element_type=jnp.float32)              # (T, W): count at lane = head idx
        nval_h = jnp.dot(msk, Rm, preferred_element_type=jnp.float32)             # (1, W): #valid outputs per head
        act_h = jnp.minimum(cnt_h, nval_h - 1.0)                                  # (T, W): sampled action per head
        act_l = jnp.dot(act_h, Bc, preferred_element_type=jnp.float32)            # (T, W): action at every head lane

        lane = jax.lax.broadcasted_iota(jnp.int32, (1, W), 1)
        local = jnp.bitwise_and(lane, NOUT - 1).astype(jnp.float32)               # o = lane % 8
        onehot = jnp.logical_and(local == act_l, valid)
        lp_sum = jnp.sum(jnp.where(onehot, logsm, 0.0), axis=1, keepdims=True)    # (T, 1)

        # ---- single lane-dense output row per sample ----
        # lanes 0..B-1 -> actions, lane B -> entropy sum, lane B+1 -> log_prob sum, rest 0
        out = jnp.where(lane < B, act_h,
              jnp.where(lane == B, ent_sum,
              jnp.where(lane == B + 1, lp_sum, jnp.float32(0.0))))
        out_ref[...] = out

    return kernel


# ----------------------------------------------------------------------------- host-side glue

def build_params(key, n_qubits):
    """Deterministic stand-in for the PyTorch-default-initialized parameters."""
    ks = jax.random.split(key, 5)

    w1 = jax.random.uniform(ks[0], (H1, 1), jnp.float32, minval=-1.0, maxval=1.0)
    b1 = jax.random.uniform(ks[1], (H1,), jnp.float32, minval=-1.0, maxval=1.0)
    bn1 = dict(gamma=jnp.ones(H1, jnp.float32), beta=jnp.zeros(H1, jnp.float32),
               mean=jnp.zeros(H1, jnp.float32), var=jnp.ones(H1, jnp.float32))

    bound2 = 1.0 / np.sqrt(H1)
    w2 = jax.random.uniform(ks[2], (H2, H1), jnp.float32, minval=-bound2, maxval=bound2)
    b2 = jax.random.uniform(ks[3], (H2,), jnp.float32, minval=-bound2, maxval=bound2)
    bn2 = dict(gamma=jnp.ones(H2, jnp.float32), beta=jnp.zeros(H2, jnp.float32),
               mean=jnp.zeros(H2, jnp.float32), var=jnp.ones(H2, jnp.float32))

    # decision heads keyed by (node % 4, decision) — shared across nodes with the same node%4
    bound_h = 1.0 / np.sqrt(H2)
    hkeys = jax.random.split(ks[4], 4 * 3 * 2)
    heads = {}
    for m in range(4):
        for dec in range(3):
            nout = NOUTS[dec]
            wk, bk = hkeys[2 * (m * 3 + dec)], hkeys[2 * (m * 3 + dec) + 1]
            heads[(m, dec)] = (
                jax.random.uniform(wk, (nout, H2), jnp.float32, minval=-bound_h, maxval=bound_h),
                jax.random.uniform(bk, (nout,), jnp.float32, minval=-bound_h, maxval=bound_h))

    return dict(w1=w1, b1=b1, bn1=bn1, w2=w2, b2=b2, bn2=bn2, heads=heads)


def pack_inputs(params, n_qubits):
    """Fold the constant-input trunk and pack everything into one lane-dense f32 slab."""
    B = 3 * n_qubits
    BNL = B * NOUT
    W = max(LANE, ((BNL + LANE - 1) // LANE) * LANE)

    # ---- trunk forward on the constant input [[1.0]] (eval-mode BN, dropout = identity) ----
    x = jnp.ones((1, 1), jnp.float32)
    x = x @ params['w1'].T + params['b1'][None, :]
    bn1 = params['bn1']
    x = (x - bn1['mean']) * jax.lax.rsqrt(bn1['var'] + BN_EPS) * bn1['gamma'] + bn1['beta']
    x = _leaky_relu(x)
    x = x @ params['w2'].T + params['b2'][None, :]
    bn2 = params['bn2']
    x = (x - bn2['mean']) * jax.lax.rsqrt(bn2['var'] + BN_EPS) * bn2['gamma'] + bn2['beta']
    x12 = _leaky_relu(x)                                         # (1, H2)

    # ---- head parameters in lane-dense layout: lane index = 8*head + output ----
    hwT = np.zeros((W, W), np.float32)
    hb = np.zeros((1, W), np.float32)
    mask = np.zeros((1, W), np.float32)
    for node in range(n_qubits):
        for dec in range(3):
            b = node * 3 + dec
            wv, bv = params['heads'][(node % 4, dec)]
            nout = NOUTS[dec]
            hwT[:H2, b * NOUT:b * NOUT + nout] = np.asarray(wv).T
            hb[0, b * NOUT:b * NOUT + nout] = np.asarray(bv)
            mask[0, b * NOUT:b * NOUT + nout] = 1.0

    # ---- constant segment matrices (pure functions of B, NOUT, W) ----
    i = np.arange(W)
    gi = i // NOUT
    Rm = (gi[:, None] == i[None, :]).astype(np.float32)          # lane i -> column i//8
    Bc = np.ascontiguousarray(Rm.T)                              # column b -> lanes of group b
    LT = ((gi[:, None] == gi[None, :]) & (i[:, None] <= i[None, :])).astype(np.float32)

    x12_row = np.zeros((1, W), np.float32)
    x12_row[0, :H2] = np.asarray(x12)[0]

    slab = np.concatenate(
        [x12_row, hb, mask, np.zeros((5, W), np.float32), hwT, Rm, Bc, LT], axis=0)  # (8 + 4W, W)
    return jnp.asarray(slab), B, W


def controller_forward(slab, unif, B, W):
    """unif: (T, W) f32, each head's uniform repeated over its 8 lanes; returns per-sample results."""
    T = unif.shape[0]
    vmem = pl.BlockSpec(memory_space=pltpu.MemorySpace.VMEM)
    out = pl.pallas_call(
        make_controller_kernel(B, W),
        out_shape=jax.ShapeDtypeStruct((T, W), jnp.float32),
        in_specs=[vmem, vmem],
        out_specs=vmem,
    )(slab, unif)
    actions = out[:, :B].astype(jnp.int32)       # (T, B)
    entropy = out[0, B]                          # scalar (same for every sample)
    log_prob = out[:, B + 1]                     # (T,)
    return actions, entropy, log_prob


def post_process(design):
    rot = {0: 'x', 1: 'y', 2: 'z'}
    ops = {0: 'H', 1: 'Px', 2: 'Py', 3: 'Pz', 4: 'CNot', 5: 'CSwap', 6: 'Tof', 7: 'CZ'}
    updated = {}
    for n in range(design.shape[0]):
        updated[str(n) + '0'] = bool(int(design[n, 0]) == 1)
        updated[str(n) + '1'] = rot[int(design[n, 1])]
        updated[str(n) + '2'] = ops[int(design[n, 2])]
    return updated


if __name__ == "__main__":
    n_qubits = 4                                   # args.n_qubits
    key = jax.random.PRNGKey(0)
    k_params, k_sample = jax.random.split(key)

    params = build_params(k_params, n_qubits)
    slab, B, W = pack_inputs(params, n_qubits)

    # One forward() call (T = 1). T > 1 draws that many independent designs in the same launch.
    T = 1
    u_heads = jax.random.uniform(k_sample, (T, B), jnp.float32)              # one uniform per decision
    unif = jnp.zeros((T, W), jnp.float32).at[:, :B * NOUT].set(jnp.repeat(u_heads, NOUT, axis=1))

    actions, entropy, log_prob = controller_forward(slab, unif, B, W)
    actions = jax.block_until_ready(actions)
    entropy = jax.block_until_ready(entropy)
    log_prob = jax.block_until_ready(log_prob)

    design = np.asarray(actions[0]).reshape(n_qubits, 3)
    updated_design = post_process(design)

    # light sanity checks (robust invariants, no RNG-dependent comparison)
    assert 0 <= design[:, 0].min() and design[:, 0].max() <= 1
    assert 0 <= design[:, 1].min() and design[:, 1].max() <= 2
    assert 0 <= design[:, 2].min() and design[:, 2].max() <= 7
    ent_f, lp_f = float(entropy), float(np.asarray(log_prob)[0])
    assert np.isfinite(ent_f) and ent_f > 0.0
    assert np.isfinite(lp_f) and lp_f < 0.0
    _ = (updated_design, ent_f, lp_f)
    print("KERNEL_OK")
</pallas_src>

<mosaic_0001>
module attributes {stable_mosaic.version = 11 : i64} {
  func.func @kernel(%arg0: memref<520x128xf32, #tpu.memory_space<vmem>>, %arg1: memref<1x128xf32, #tpu.memory_space<vmem>>, %arg2: memref<1x128xf32, #tpu.memory_space<vmem>>) attributes {dimension_semantics = [], scalar_prefetch = 0 : i64, scratch_operands = 0 : i64, tpu.core_type = #tpu.core_type<tc>} {
    %c0 = arith.constant 0 : index
    %c0_0 = arith.constant 0 : index
    %0 = vector.load %arg0[%c0, %c0_0] : memref<520x128xf32, #tpu.memory_space<vmem>>, vector<1x128xf32>
    %c1 = arith.constant 1 : index
    %c0_1 = arith.constant 0 : index
    %1 = vector.load %arg0[%c1, %c0_1] : memref<520x128xf32, #tpu.memory_space<vmem>>, vector<1x128xf32>
    %c2 = arith.constant 2 : index
    %c0_2 = arith.constant 0 : index
    %2 = vector.load %arg0[%c2, %c0_2] : memref<520x128xf32, #tpu.memory_space<vmem>>, vector<1x128xf32>
    %c8 = arith.constant 8 : index
    %c0_3 = arith.constant 0 : index
    %3 = vector.load %arg0[%c8, %c0_3] : memref<520x128xf32, #tpu.memory_space<vmem>>, vector<128x128xf32>
    %c136 = arith.constant 136 : index
    %c0_4 = arith.constant 0 : index
    %4 = vector.load %arg0[%c136, %c0_4] : memref<520x128xf32, #tpu.memory_space<vmem>>, vector<128x128xf32>
    %c264 = arith.constant 264 : index
    %c0_5 = arith.constant 0 : index
    %5 = vector.load %arg0[%c264, %c0_5] : memref<520x128xf32, #tpu.memory_space<vmem>>, vector<128x128xf32>
    %c392 = arith.constant 392 : index
    %c0_6 = arith.constant 0 : index
    %6 = vector.load %arg0[%c392, %c0_6] : memref<520x128xf32, #tpu.memory_space<vmem>>, vector<128x128xf32>
    %cst = arith.constant 0.000000e+00 : f32
    %7 = vector.broadcast %cst : f32 to vector<1x128xf32>
    %8 = arith.cmpf ogt, %2, %7 : vector<1x128xf32>
    %cst_7 = arith.constant dense<0.000000e+00> : vector<1x128xf32>
    %9 = tpu.matmul %0, %3, %cst_7 {dimension_numbers = #tpu.dot_dimension_numbers<[1], [0], [0], [1], [0, 0, 1, 1], [], []>} : vector<1x128xf32>, vector<128x128xf32>, vector<1x128xf32> -> vector<1x128xf32>
    %10 = arith.addf %9, %1 : vector<1x128xf32>
    %cst_8 = arith.constant -1.000000e+30 : f32
    %11 = vector.broadcast %cst_8 : f32 to vector<1x128xf32>
    %12 = arith.select %8, %10, %11 : vector<1x128xi1>, vector<1x128xf32>
    %cst_9 = arith.constant dense<0xFF800000> : vector<1xf32>
    %13 = vector.multi_reduction <maximumf>, %12, %cst_9 [1] : vector<1x128xf32> to vector<1xf32>
    %14 = vector.shape_cast %13 : vector<1xf32> to vector<1x1xf32>
    %15 = vector.broadcast %14 : vector<1x1xf32> to vector<1x128xf32>
    %16 = arith.subf %12, %15 : vector<1x128xf32>
    %17 = math.exp %16 : vector<1x128xf32>
    %cst_10 = arith.constant dense<0.000000e+00> : vector<1x128xf32>
    %18 = tpu.matmul %17, %4, %cst_10 {dimension_numbers = #tpu.dot_dimension_numbers<[1], [0], [0], [1], [0, 0, 1, 1], [], []>} : vector<1x128xf32>, vector<128x128xf32>, vector<1x128xf32> -> vector<1x128xf32>
    %cst_11 = arith.constant dense<0.000000e+00> : vector<1x128xf32>
    %19 = tpu.matmul %18, %5, %cst_11 {dimension_numbers = #tpu.dot_dimension_numbers<[1], [0], [0], [1], [0, 0, 1, 1], [], []>} : vector<1x128xf32>, vector<128x128xf32>, vector<1x128xf32> -> vector<1x128xf32>
    %cst_12 = arith.constant 1.000000e-30 : f32
    %20 = vector.broadcast %cst_12 : f32 to vector<1x128xf32>
    %21 = arith.maximumf %19, %20 : vector<1x128xf32>
    %22 = arith.divf %17, %21 : vector<1x128xf32>
    %23 = vector.broadcast %14 : vector<1x1xf32> to vector<1x128xf32>
    %24 = arith.subf %12, %23 : vector<1x128xf32>
    %25 = math.log %21 : vector<1x128xf32>
    %26 = arith.subf %24, %25 : vector<1x128xf32>
    %27 = arith.mulf %22, %26 : vector<1x128xf32>
    %cst_13 = arith.constant 0.000000e+00 : f32
    %28 = vector.broadcast %cst_13 : f32 to vector<1x128xf32>
    %29 = arith.select %8, %27, %28 : vector<1x128xi1>, vector<1x128xf32>
    %cst_14 = arith.constant dense<0.000000e+00> : vector<1xf32>
    %30 = vector.multi_reduction <add>, %29, %cst_14 [1] : vector<1x128xf32> to vector<1xf32>
    %31 = vector.shape_cast %30 : vector<1xf32> to vector<1x1xf32>
    %cst_15 = arith.constant 0.000000e+00 : f32
    %32 = vector.broadcast %cst_15 : f32 to vector<1x1xf32>
    %33 = arith.subf %32, %31 : vector<1x1xf32>
    %cst_16 = arith.constant dense<0.000000e+00> : vector<1x128xf32>
    %34 = tpu.matmul %22, %6, %cst_16 {dimension_numbers = #tpu.dot_dimension_numbers<[1], [0], [0], [1], [0, 0, 1, 1], [], []>} : vector<1x128xf32>, vector<128x128xf32>, vector<1x128xf32> -> vector<1x128xf32>
    %c0_17 = arith.constant 0 : index
    %c0_18 = arith.constant 0 : index
    %35 = vector.load %arg1[%c0_17, %c0_18] : memref<1x128xf32, #tpu.memory_space<vmem>>, vector<1x128xf32>
    %36 = arith.cmpf olt, %34, %35 : vector<1x128xf32>
    %37 = arith.andi %36, %8 : vector<1x128xi1>
    %cst_19 = arith.constant 1.000000e+00 : f32
    %cst_20 = arith.constant 0.000000e+00 : f32
    %38 = vector.broadcast %cst_19 : f32 to vector<1x128xf32>
    %39 = vector.broadcast %cst_20 : f32 to vector<1x128xf32>
    %40 = arith.select %37, %38, %39 : vector<1x128xi1>, vector<1x128xf32>
    %cst_21 = arith.constant dense<0.000000e+00> : vector<1x128xf32>
    %41 = tpu.matmul %40, %4, %cst_21 {dimension_numbers = #tpu.dot_dimension_numbers<[1], [0], [0], [1], [0, 0, 1, 1], [], []>} : vector<1x128xf32>, vector<128x128xf32>, vector<1x128xf32> -> vector<1x128xf32>
    %cst_22 = arith.constant dense<0.000000e+00> : vector<1x128xf32>
    %42 = tpu.matmul %2, %4, %cst_22 {dimension_numbers = #tpu.dot_dimension_numbers<[1], [0], [0], [1], [0, 0, 1, 1], [], []>} : vector<1x128xf32>, vector<128x128xf32>, vector<1x128xf32> -> vector<1x128xf32>
    %cst_23 = arith.constant 1.000000e+00 : f32
    %43 = vector.broadcast %cst_23 : f32 to vector<1x128xf32>
    %44 = arith.subf %42, %43 : vector<1x128xf32>
    %45 = arith.minimumf %41, %44 : vector<1x128xf32>
    %cst_24 = arith.constant dense<0.000000e+00> : vector<1x128xf32>
    %46 = tpu.matmul %45, %5, %cst_24 {dimension_numbers = #tpu.dot_dimension_numbers<[1], [0], [0], [1], [0, 0, 1, 1], [], []>} : vector<1x128xf32>, vector<128x128xf32>, vector<1x128xf32> -> vector<1x128xf32>
    %47 = tpu.iota {dimensions = array<i32: 1>} : vector<1x128xi32>
    %c7_i32 = arith.constant 7 : i32
    %48 = vector.broadcast %c7_i32 : i32 to vector<1x128xi32>
    %49 = arith.andi %47, %48 : vector<1x128xi32>
    %50 = arith.sitofp %49 : vector<1x128xi32> to vector<1x128xf32>
    %51 = arith.cmpf oeq, %50, %46 : vector<1x128xf32>
    %52 = arith.andi %51, %8 : vector<1x128xi1>
    %cst_25 = arith.constant 0.000000e+00 : f32
    %53 = vector.broadcast %cst_25 : f32 to vector<1x128xf32>
    %54 = arith.select %52, %26, %53 : vector<1x128xi1>, vector<1x128xf32>
    %cst_26 = arith.constant dense<0.000000e+00> : vector<1xf32>
    %55 = vector.multi_reduction <add>, %54, %cst_26 [1] : vector<1x128xf32> to vector<1xf32>
    %56 = vector.shape_cast %55 : vector<1xf32> to vector<1x1xf32>
    %c12_i32 = arith.constant 12 : i32
    %57 = vector.broadcast %c12_i32 : i32 to vector<1x128xi32>
    %58 = arith.cmpi slt, %47, %57 : vector<1x128xi32>
    %c12_i32_27 = arith.constant 12 : i32
    %59 = vector.broadcast %c12_i32_27 : i32 to vector<1x128xi32>
    %60 = arith.cmpi eq, %47, %59 : vector<1x128xi32>
    %c13_i32 = arith.constant 13 : i32
    %61 = vector.broadcast %c13_i32 : i32 to vector<1x128xi32>
    %62 = arith.cmpi eq, %47, %61 : vector<1x128xi32>
    %cst_28 = arith.constant 0.000000e+00 : f32
    %63 = vector.shape_cast %56 : vector<1x1xf32> to vector<1x1xf32>
    %64 = vector.broadcast %63 : vector<1x1xf32> to vector<1x128xf32>
    %65 = vector.broadcast %cst_28 : f32 to vector<1x128xf32>
    %66 = arith.select %62, %64, %65 : vector<1x128xi1>, vector<1x128xf32>
    %67 = vector.shape_cast %33 : vector<1x1xf32> to vector<1x1xf32>
    %68 = vector.broadcast %67 : vector<1x1xf32> to vector<1x128xf32>
    %69 = arith.select %60, %68, %66 : vector<1x128xi1>, vector<1x128xf32>
    %70 = arith.select %58, %45, %69 : vector<1x128xi1>, vector<1x128xf32>
    %c0_29 = arith.constant 0 : index
    %c0_30 = arith.constant 0 : index
    %71 = vector.load %arg2[%c0_29, %c0_30] : memref<1x128xf32, #tpu.memory_space<vmem>>, vector<1x128xf32>
    tpu.vector_store %arg2[%c0_29, %c0_30], %70 {strides = array<i32>} : memref<1x128xf32, #tpu.memory_space<vmem>>, vector<1x128xf32>,
    return
  }
}

</mosaic_0001>

<bundles_post_ra>
// kernel: tpu_custom_call.1
= control target key start
LH: loop header
LB: loop body
LE: loop exit
PB: predicated region body
PF: predicated region fallthrough
CT: control target
= control target key end

     0   :  { %7 = vsyncpa [#allocation3], 0  ;;  %s469_s0 = inlined_call_operand.hbm [shape: f32[520,128], index: 0, kind: input, shape index: {}]   ;;  %s470_s1 = inlined_call_operand.hbm [shape: f32[1,128], index: 1, kind: input, shape index: {}]   ;;  %s471_s2 = inlined_call_operand.hbm [shape: f32[1,128], index: 2, kind: output, shape index: {}]  }
   0x1   :  { %8 = vsyncpa [#allocation6], 0 }
   0x2   :  { %9 = vsyncpa [#allocation4], 0  ;;  %s14_s11 = sshll.u32 %s469_s0, 4  ;;  %s416_s12 = smov [#allocation2]   ;;  %s15_s11 = int_to_ptr.hbm [resolvable:$true] %s14_s11 }
   0x3   :  { %s16_s13 = sshll.u32 %s416_s12, 4  ;;  %s28_s16 = sshll.u32 %s470_s1, 4  ;;  %s17_s13 = int_to_ptr.vmem [resolvable:$true] %s16_s13  ;;  %s29_s16 = int_to_ptr.hbm [resolvable:$true] %s28_s16 }
   0x4   :  { %s417_s17 = smov 128   ;;  %s418_s18 = smov 8  }
   0x5   :  { %22 = dma.hbm_to_vmem [thread:$0]  %s15_s11, 8320, %s17_s13, [#allocation3], %s417_s17, %s417_s17, %s418_s18  }
   0x6   :  { %s419_s19 = smov [#allocation5]  }
   0x7   :  { %s30_s20 = sshll.u32 %s419_s19, 4  ;;  %s31_s20 = int_to_ptr.vmem [resolvable:$true] %s30_s20 }
   0x8   :  { %33 = dma.hbm_to_vmem [thread:$0]  %s29_s16, 16, %s31_s20, [#allocation6]  }
   0x9   :  { %410 = dma.done.wait [#allocation3], 8320  }
   0xa   :  { %411 = vsyncadd [#allocation3], 4294958976 }
   0xb   :  { %412 = dma.done.wait [#allocation6], 16  }
   0xc   :  { %413 = vsyncadd [#allocation6], 4294967280  ;;  %v60_v0 = vld [vmem:[#allocation2 + $0x80] sm:$0xff]  ;;  %v59_v1 = vld [vmem:[#allocation2 + $0x78] sm:$0xff]  ;;  %vm131_vm1 = vcmask 1040384   ;;  %s421_s0 = smov [#allocation7]  }
   0xd   :  { %110 = vmatpush.msra.mxu0 %v60_v0  ;;  %v58_v2 = vld [vmem:[#allocation2 + $0x70] sm:$0xff]  ;;  %v57_v3 = vld [vmem:[#allocation2 + $0x68] sm:$0xff]  ;;  %v56_v4 = vld [vmem:[#allocation2 + $0x60] sm:$0xff]  ;;  %s311_s1 = sshll.u32 %s421_s0, 4  ;;  %s313_s23 = sshll.u32 %s471_s2, 4  ;;  %s312_s1 = int_to_ptr.vmem [resolvable:$true] %s311_s1  ;;  %s314_s23 = int_to_ptr.hbm [resolvable:$true] %s313_s23 }
   0xe   :  { %v55_v5 = vld [vmem:[#allocation2 + $0x58] sm:$0xff]  ;;  %v54_v6 = vld [vmem:[#allocation2 + $0x50] sm:$0xff]  ;;  %v53_v7 = vld [vmem:[#allocation2 + $0x48] sm:$0xff] }
   0xf   :  { %111 = vmatpush.msra.mxu0 %v59_v1  ;;  %v52_v8 = vld [vmem:[#allocation2 + $0x40] sm:$0xff]  ;;  %v51_v9 = vld [vmem:[#allocation2 + $0x38] sm:$0xff]  ;;  %v50_v10 = vld [vmem:[#allocation2 + $0x30] sm:$0xff] }
  0x10   :  { %v49_v11 = vld [vmem:[#allocation2 + $0x28] sm:$0xff]  ;;  %v48_v12 = vld [vmem:[#allocation2 + $0x20] sm:$0xff]  ;;  %v47_v13 = vld [vmem:[#allocation2 + $0x18] sm:$0xff] }
  0x11   :  { %112 = vmatpush.msra.mxu0 %v58_v2  ;;  %v46_v14 = vld [vmem:[#allocation2 + $0x10] sm:$0xff]  ;;  %v45_v15 = vld [vmem:[#allocation2 + $0x8] sm:$0xff]  ;;  %v42_v16 = vld [vmem:[#allocation2] sm:$0x1] }
  0x12   :  { %v76_v17 = vld [vmem:[#allocation2 + $0x100] sm:$0xff]  ;;  %v75_v18 = vld [vmem:[#allocation2 + $0xf8] sm:$0xff]  ;;  %v74_v19 = vld [vmem:[#allocation2 + $0xf0] sm:$0xff] }
  0x13   :  { %113 = vmatpush.msra.mxu0 %v57_v3  ;;  %138 = vmatpush.msra.mxu1 %v76_v17  ;;  %v73_v20 = vld [vmem:[#allocation2 + $0xe8] sm:$0xff]  ;;  %v72_v21 = vld [vmem:[#allocation2 + $0xe0] sm:$0xff]  ;;  %v71_v22 = vld [vmem:[#allocation2 + $0xd8] sm:$0xff] }
  0x14   :  { %v70_v23 = vld [vmem:[#allocation2 + $0xd0] sm:$0xff]  ;;  %v69_v24 = vld [vmem:[#allocation2 + $0xc8] sm:$0xff]  ;;  %v68_v25 = vld [vmem:[#allocation2 + $0xc0] sm:$0xff] }
  0x15   :  { %114 = vmatpush.msra.mxu0 %v56_v4  ;;  %139 = vmatpush.msra.mxu1 %v75_v18  ;;  %v67_v26 = vld [vmem:[#allocation2 + $0xb8] sm:$0xff]  ;;  %v443_v27 = vld [vmem:[#allocation2 + $0x2] sm:$0x1]  ;;  %v43_v28 = vld [vmem:[#allocation2 + $0x1] sm:$0x1] }
  0x16   :  { %vm109_vm0 = vcmp.gt.f32.partialorder %v443_v27, 0.0  ;;  %v66_v33 = vld [vmem:[#allocation2 + $0xb0] sm:$0xff]  ;;  %v65_v34 = vld [vmem:[#allocation2 + $0xa8] sm:$0xff]  ;;  %v64_v35 = vld [vmem:[#allocation2 + $0xa0] sm:$0xff] }
  0x17   :  { %115 = vmatpush.msra.mxu0 %v55_v5  ;;  %140 = vmatpush.msra.mxu1 %v74_v19  ;;  %v63_v36 = vld [vmem:[#allocation2 + $0x98] sm:$0xff]  ;;  %v62_v37 = vld [vmem:[#allocation2 + $0x90] sm:$0xff]  ;;  %v61_v38 = vld [vmem:[#allocation2 + $0x88] sm:$0xff] }
  0x18   :  { %v92_v39 = vld [vmem:[#allocation2 + $0x180] sm:$0xff]  ;;  %v91_v40 = vld [vmem:[#allocation2 + $0x178] sm:$0xff]  ;;  %v90_v41 = vld [vmem:[#allocation2 + $0x170] sm:$0xff] }
  0x19   :  { %116 = vmatpush.msra.mxu0 %v54_v6  ;;  %141 = vmatpush.msra.mxu1 %v73_v20  ;;  %v89_v42 = vld [vmem:[#allocation2 + $0x168] sm:$0xff]  ;;  %v88_v43 = vld [vmem:[#allocation2 + $0x160] sm:$0xff]  ;;  %v87_v44 = vld [vmem:[#allocation2 + $0x158] sm:$0xff] }
  0x1a   :  { %158 = vmatpush.msra.mxu2 %v92_v39  ;;  %v86_v45 = vld [vmem:[#allocation2 + $0x150] sm:$0xff]  ;;  %v85_v46 = vld [vmem:[#allocation2 + $0x148] sm:$0xff]  ;;  %v84_v47 = vld [vmem:[#allocation2 + $0x140] sm:$0xff] }
  0x1b   :  { %117 = vmatpush.msra.mxu0 %v53_v7  ;;  %142 = vmatpush.msra.mxu1 %v72_v21  ;;  %v83_v48 = vld [vmem:[#allocation2 + $0x138] sm:$0xff]  ;;  %v82_v49 = vld [vmem:[#allocation2 + $0x130] sm:$0xff]  ;;  %v81_v51 = vld [vmem:[#allocation2 + $0x128] sm:$0xff] }
  0x1c   :  { %159 = vmatpush.msra.mxu2 %v91_v40  ;;  %v80_v53 = vld [vmem:[#allocation2 + $0x120] sm:$0xff]  ;;  %v79_v55 = vld [vmem:[#allocation2 + $0x118] sm:$0xff]  ;;  %v78_v56 = vld [vmem:[#allocation2 + $0x110] sm:$0xff] }
  0x1d   :  { %118 = vmatpush.msra.mxu0 %v52_v8  ;;  %143 = vmatpush.msra.mxu1 %v71_v22  ;;  %v77_v58 = vld [vmem:[#allocation2 + $0x108] sm:$0xff]  ;;  %v108_v59 = vld [vmem:[#allocation2 + $0x200] sm:$0xff]  ;;  %v107_v60 = vld [vmem:[#allocation2 + $0x1f8] sm:$0xff] }
  0x1e   :  { %160 = vmatpush.msra.mxu2 %v90_v41  ;;  %203 = vmatpush.msra.mxu3 %v108_v59  ;;  %v106_v61 = vld [vmem:[#allocation2 + $0x1f0] sm:$0xff]  ;;  %v105_v62 = vld [vmem:[#allocation2 + $0x1e8] sm:$0xff]  ;;  %v104_v63 = vld [vmem:[#allocation2 + $0x1e0] sm:$0xff] }
  0x1f   :  { %119 = vmatpush.msra.mxu0 %v51_v9  ;;  %144 = vmatpush.msra.mxu1 %v70_v23  ;;  %v103_v1 = vld [vmem:[#allocation2 + $0x1d8] sm:$0xff]  ;;  %v102_v2 = vld [vmem:[#allocation2 + $0x1d0] sm:$0xff]  ;;  %v101_v3 = vld [vmem:[#allocation2 + $0x1c8] sm:$0xff] }
  0x20   :  { %161 = vmatpush.msra.mxu2 %v89_v42  ;;  %204 = vmatpush.msra.mxu3 %v107_v60  ;;  %v100_v4 = vld [vmem:[#allocation2 + $0x1c0] sm:$0xff]  ;;  %v99_v5 = vld [vmem:[#allocation2 + $0x1b8] sm:$0xff]  ;;  %v98_v6 = vld [vmem:[#allocation2 + $0x1b0] sm:$0xff] }
  0x21   :  { %120 = vmatpush.msra.mxu0 %v50_v10  ;;  %145 = vmatpush.msra.mxu1 %v69_v24  ;;  %v97_v7 = vld [vmem:[#allocation2 + $0x1a8] sm:$0xff]  ;;  %v96_v8 = vld [vmem:[#allocation2 + $0x1a0] sm:$0xff]  ;;  %v95_v9 = vld [vmem:[#allocation2 + $0x198] sm:$0xff] }
  0x22   :  { %162 = vmatpush.msra.mxu2 %v88_v43  ;;  %205 = vmatpush.msra.mxu3 %v106_v61  ;;  %v94_v10 = vld [vmem:[#allocation2 + $0x190] sm:$0xff] }
  0x23   :  { %121 = vmatpush.msra.mxu0 %v49_v11  ;;  %146 = vmatpush.msra.mxu1 %v68_v25  ;;  %v93_v11 = vld [vmem:[#allocation2 + $0x188] sm:$0xff] }
  0x24   :  { %163 = vmatpush.msra.mxu2 %v87_v44  ;;  %206 = vmatpush.msra.mxu3 %v105_v62 }
  0x25   :  { %122 = vmatpush.msra.mxu0 %v48_v12  ;;  %147 = vmatpush.msra.mxu1 %v67_v26 }
  0x26   :  { %164 = vmatpush.msra.mxu2 %v86_v45  ;;  %207 = vmatpush.msra.mxu3 %v104_v63 }
  0x27   :  { %123 = vmatpush.msra.mxu0 %v47_v13  ;;  %148 = vmatpush.msra.mxu1 %v66_v33 }
  0x28   :  { %165 = vmatpush.msra.mxu2 %v85_v46  ;;  %208 = vmatpush.msra.mxu3 %v103_v1 }
  0x29   :  { %124 = vmatpush.msra.mxu0 %v46_v14  ;;  %149 = vmatpush.msra.mxu1 %v65_v34 }
  0x2a   :  { %166 = vmatpush.msra.mxu2 %v84_v47  ;;  %209 = vmatpush.msra.mxu3 %v102_v2 }
  0x2b   :  { %125 = vmatpush.msra.mxu0 %v45_v15  ;;  %150 = vmatpush.msra.mxu1 %v64_v35 }
  0x2c   :  { %126 = vmatmul.f32.vlgmr.msra.gmra.mxu0 %v42_v16  ;;  %167 = vmatpush.msra.mxu2 %v83_v48 }
  0x2d   :  { %227 = vmatpush.msrb.mxu0 %v76_v17  ;;  %151 = vmatpush.msra.mxu1 %v63_v36 }
  0x2e   :  { %168 = vmatpush.msra.mxu2 %v82_v49  ;;  %210 = vmatpush.msra.mxu3 %v101_v3 }
  0x2f   :  { %228 = vmatpush.msrb.mxu0 %v75_v18  ;;  %152 = vmatpush.msra.mxu1 %v62_v37 }
  0x30   :  { %169 = vmatpush.msra.mxu2 %v81_v51  ;;  %211 = vmatpush.msra.mxu3 %v100_v4 }
  0x31   :  { %229 = vmatpush.msrb.mxu0 %v74_v19  ;;  %153 = vmatpush.msra.mxu1 %v61_v38 }
  0x32   :  { %170 = vmatpush.msra.mxu2 %v80_v53  ;;  %212 = vmatpush.msra.mxu3 %v99_v5 }
  0x33   :  { %230 = vmatpush.msrb.mxu0 %v73_v20  ;;  %247 = vmatpush.msrb.mxu1 %v76_v17 }
  0x34   :  { %171 = vmatpush.msra.mxu2 %v79_v55  ;;  %213 = vmatpush.msra.mxu3 %v98_v6 }
  0x35   :  { %231 = vmatpush.msrb.mxu0 %v72_v21  ;;  %248 = vmatpush.msrb.mxu1 %v75_v18 }
  0x36   :  { %172 = vmatpush.msra.mxu2 %v78_v56  ;;  %214 = vmatpush.msra.mxu3 %v97_v7 }
  0x37   :  { %232 = vmatpush.msrb.mxu0 %v71_v22  ;;  %249 = vmatpush.msrb.mxu1 %v74_v19 }
  0x38   :  { %173 = vmatpush.msra.mxu2 %v77_v58  ;;  %215 = vmatpush.msra.mxu3 %v96_v8 }
  0x39   :  { %233 = vmatpush.msrb.mxu0 %v70_v23  ;;  %250 = vmatpush.msrb.mxu1 %v73_v20 }
  0x3a   :  { %269 = vmatpush.msrb.mxu2 %v92_v39  ;;  %216 = vmatpush.msra.mxu3 %v95_v9  ;;  %v289_v39 = vlaneseq }
  0x3b   :  { %234 = vmatpush.msrb.mxu0 %v69_v24  ;;  %251 = vmatpush.msrb.mxu1 %v72_v21 }
  0x3c   :  { %270 = vmatpush.msrb.mxu2 %v91_v40  ;;  %217 = vmatpush.msra.mxu3 %v94_v10  ;;  %v290_v40 = vand.u32 127, %v289_v39 }
  0x3d   :  { %235 = vmatpush.msrb.mxu0 %v68_v25  ;;  %252 = vmatpush.msrb.mxu1 %v71_v22 }
  0x3e   :  { %271 = vmatpush.msrb.mxu2 %v90_v41  ;;  %218 = vmatpush.msra.mxu3 %v93_v11  ;;  %v291_v41 = vand.u32 7, %v290_v40  ;;  %vm301_vm10 = vcmp.eq.s32.totalorder %v290_v40, 13  ;;  %vm300_vm11 = vcmp.eq.s32.totalorder %v290_v40, 12  ;;  %vm299_vm12 = vcmp.lt.s32.totalorder %v290_v40, 12 }
  0x3f   :  { %236 = vmatpush.msrb.mxu0 %v67_v26  ;;  %253 = vmatpush.msrb.mxu1 %v70_v23 }
  0x40   :  { %272 = vmatpush.msrb.mxu2 %v89_v42  ;;  %v292_v42 = vcvt.s32.f32 %v291_v41 }
  0x41   :  { %237 = vmatpush.msrb.mxu0 %v66_v33  ;;  %254 = vmatpush.msrb.mxu1 %v69_v24 }
  0x42   :  { %273 = vmatpush.msrb.mxu2 %v88_v43 }
  0x43   :  { %238 = vmatpush.msrb.mxu0 %v65_v34  ;;  %255 = vmatpush.msrb.mxu1 %v68_v25 }
  0x44   :  { %274 = vmatpush.msrb.mxu2 %v87_v44 }
  0x45   :  { %239 = vmatpush.msrb.mxu0 %v64_v35  ;;  %256 = vmatpush.msrb.mxu1 %v67_v26 }
  0x46   :  { %275 = vmatpush.msrb.mxu2 %v86_v45 }
  0x47   :  { %240 = vmatpush.msrb.mxu0 %v63_v36  ;;  %257 = vmatpush.msrb.mxu1 %v66_v33 }
  0x48   :  { %276 = vmatpush.msrb.mxu2 %v85_v46 }
  0x49   :  { %241 = vmatpush.msrb.mxu0 %v62_v37  ;;  %258 = vmatpush.msrb.mxu1 %v65_v34  ;;  %v420_v34 = vmov 1.0  }
  0x4a   :  { %277 = vmatpush.msrb.mxu2 %v84_v47 }
  0x4b   :  { %242 = vmatpush.msrb.mxu0 %v61_v38  ;;  %259 = vmatpush.msrb.mxu1 %v64_v35 }
  0x4c   :  { %278 = vmatpush.msrb.mxu2 %v83_v48 }
  0x4d   :  { %260 = vmatpush.msrb.mxu1 %v63_v36 }
  0x4e   :  { %279 = vmatpush.msrb.mxu2 %v82_v49 }
  0x4f   :  { %261 = vmatpush.msrb.mxu1 %v62_v37 }
  0x50   :  { %280 = vmatpush.msrb.mxu2 %v81_v51 }
  0x51   :  { %262 = vmatpush.msrb.mxu1 %v61_v38 }
  0x52   :  { %281 = vmatpush.msrb.mxu2 %v80_v53 }
  0x54   :  { %282 = vmatpush.msrb.mxu2 %v79_v55 }
  0x56   :  { %283 = vmatpush.msrb.mxu2 %v78_v56 }
  0x58   :  { %284 = vmatpush.msrb.mxu2 %v77_v58 }
  0xa9   :  { %v127_v29 = vpop.f32.mrf.mxu0 }
  0xaa   :  { %v128_v30 = vadd.f32 %v127_v29, %v43_v28 }
  0xac   :  { %v130_v31 = vsel %vm109_vm0, %v128_v30, -1e+30 }
  0xad   :  { %v132_v32 = vsel %vm131_vm1, %v130_v31, -inf }
  0xae   :  { %133 = vmax.xlane.f32.xlu0 %v132_v32  ;;  %v223_v32 = vld [vmem:[#allocation5] sm:$0x1] }
 0x121   :  { %v134_v50 = vpop.xlane.xlu0 %133 }
 0x122   :  { %v449_v52 = vsub.f32 %v130_v31, %v134_v50 }
 0x124   :  { %v136_v54 = vmul.f32 1.442695, %v449_v52 }
 0x126   :  { %332 = vpow2.f32 %v136_v54 }
 0x12c   :  { %v452_v57 = vpop.eup %332 }
 0x12d   :  { %154 = vmatmul.f32.vlgmr.msra.gmra.mxu1 %v452_v57 }
 0x135   :  { %263 = vmatmul.f32.vlgmr.msrb.gmra.mxu1 %v443_v27 }
 0x1aa   :  { %v155_v0 = vpop.f32.mrf.mxu1 }
 0x1ab   :  { %174 = vmatmul.f32.vlgmr.msra.gmra.mxu2 %v155_v0 }
 0x1b2   :  { %v264_v35 = vpop.f32.mrf.mxu1 }
 0x1b3   :  { %v325_v36 = vadd.f32 -1.0, %v264_v35 }
 0x22e   :  { %v175_v12 = vpop.f32.mrf.mxu2 }
 0x22f   :  { %v178_v13 = vmax.f32 %v175_v12, 1e-30 }
 0x231   :  { %334 = vrcp.f32 %v178_v13  ;;  %v190_v18 = vand.u32 2147483648, %v178_v13  ;;  %v188_v20 = vand.u32 2147483647, %v178_v13  ;;  %vm184_vm3 = vweird.f32 %v178_v13 }
 0x232   :  { %336 = vlog2.f32 %v178_v13 }
 0x233   :  { %v191_v23 = vor.u32 1.1754944e-38, %v190_v18  ;;  %vm189_vm5 = vcmp.eq.f32.partialorder %v188_v20, 8.507059e+37 }
 0x237   :  { %v335_v14 = vpop.eup %334 }
 0x238   :  { %v180_v15 = vmul.f32 %v335_v14, %v178_v13  ;;  %v337_v17 = vpop.eup %336  ;;  %vm185_vm2 = vweird.f32 %v335_v14 }
 0x239   :  { %v195_v22 = vmul.f32 0.6931472, %v337_v17  ;;  %vm186_vm4 = vmor %vm184_vm3, %vm185_vm2 }
 0x23a   :  { %v181_v16 = vsub.f32 1.0, %v180_v15 }
 0x23b   :  { %v196_v28 = vsub.f32 %v449_v52, %v195_v22 }
 0x23c   :  { %v182_v19 = vmul.f32 %v335_v14, %v181_v16 }
 0x23e   :  { %v183_v21 = vadd.f32 %v335_v14, %v182_v19 }
 0x240   :  { %v187_v24 = vsel %vm186_vm4, %v335_v14, %v183_v21 }
 0x241   :  { %v192_v25 = vsel %vm189_vm5, %v191_v23, %v187_v24 }
 0x242   :  { %v193_v26 = vmul.f32 %v452_v57, %v192_v25 }
 0x244   :  { %219 = vmatmul.f32.vlgmr.msra.gmra.mxu3 %v193_v26  ;;  %v197_v29 = vmul.f32 %v196_v28, %v193_v26 }
 0x246   :  { %v198_v30 = vsel %vm109_vm0, %v197_v29, 0.0 }
 0x247   :  { %v199_v31 = vsel %vm131_vm1, %v198_v30, 0.0 }
 0x248   :  { %200 = vadd.xlane.f32.xlu0 %v199_v31 }
 0x2bb   :  { %v201_v46 = vpop.xlane.xlu0 %200 }
 0x2bc   :  { %v202_v47 = vsub.f32 0.0, %v201_v46 }
 0x2c7   :  { %v220_v33 = vpop.f32.mrf.mxu3 }
 0x2c8   :  { %vm224_vm6 = vcmp.lt.f32.partialorder %v220_v33, %v223_v32 }
 0x2c9   :  { %vm225_vm7 = vmand %vm224_vm6, %vm109_vm0 }
 0x2ca   :  { %324 = vmatmul.msk.f32.vlgmr.msrb.gmra.mxu0 %vm225_vm7, %v420_v34 }
 0x347   :  { %v244_v37 = vpop.f32.mrf.mxu0 }
 0x348   :  { %v268_v38 = vmin.f32 %v244_v37, %v325_v36 }
 0x34a   :  { %285 = vmatmul.f32.vlgmr.msrb.gmra.mxu2 %v268_v38 }
 0x3cd   :  { %v286_v43 = vpop.f32.mrf.mxu2 }
 0x3ce   :  { %vm293_vm8 = vcmp.eq.f32.partialorder %v292_v42, %v286_v43 }
 0x3cf   :  { %vm294_vm9 = vmand %vm293_vm8, %vm109_vm0 }
 0x3d0   :  { %v295_v44 = vsel %vm294_vm9, %v196_v28, 0.0 }
 0x3d1   :  { %v296_v45 = vsel %vm131_vm1, %v295_v44, 0.0 }
 0x3d2   :  { %297 = vadd.xlane.f32.xlu1 %v296_v45 }
 0x445   :  { %v298_v48 = vpop.xlane.xlu1 %297 }
 0x446   :  { %v302_v49 = vsel %vm301_vm10, %v298_v48, 0.0 }
 0x447   :  { %v303_v50 = vsel %vm300_vm11, %v202_v47, %v302_v49 }
 0x448   :  { %v304_v27 = vsel %vm299_vm12, %v268_v38, %v303_v50 }
 0x449   :  { %305 = vst [vmem:[#allocation7] sm:$0x1] %v304_v27 }
 0x44a   :  { %316 = dma.vmem_to_hbm [thread:$0]  %s312_s1, 16, %s314_s23, [#allocation4]  }
 0x44b   :  { %414 = dma.done.wait [#allocation4], 16  }
 0x44c   :  { %415 = vsyncadd [#allocation4], 4294967280 }
 0x44d   :  { %321 = vsyncpa [#allocation3], 1 }
 0x44e   :  { %322 = vsyncpa [#allocation6], 1 }
 0x44f   :  { %323 = vsyncpa [#allocation4], 1 }

</bundles_post_ra>
